<compile_context>
chip_gen: v7x
topology: tpu7x:2x2x1
jax: 0.10.0
libtpu: 0.0.40
codegen_flags: <defaults>
</compile_context>

<pallas_src>
import functools

import jax
import jax.numpy as jnp
from jax.experimental import pallas as pl
from jax.experimental.pallas import tpu as pltpu


def _silu(v):
    return v * jax.nn.sigmoid(v)


# -----------------------------------------------------------------------------
# Kernel: one (batch, lane-tile) step of SiLU->conv3->SiLU->conv3 + 1x1 skip
# -----------------------------------------------------------------------------
def _unpatcher_kernel(x_ref, w1_ref, b1_ref, w2_ref, b2_ref, ws_ref, bs_ref,
                      o_ref, *, tile, lp_valid):
    # x_ref : (C, W_in)      one batch row, patch-rearranged, zero-padded by 2
    #                        columns on the left and >=2 on the right.
    # w1_ref: (3, Cout, C)   per-tap conv1 weights      b1_ref: (Cout, 1)
    # w2_ref: (3, Cout, Cout)                           b2_ref: (Cout, 1)
    # ws_ref: (Cout, C)      1x1 skip projection        bs_ref: (Cout, 1)
    # o_ref : (Cout, tile)   lane-dense output tile (tile % 128 == 0)
    j = pl.program_id(1)
    t0 = pl.multiple_of(j * tile, 128)        # output-column origin (valid coords)

    # Window over padded coords [t0, t0+tile+4) == valid coords [t0-2, t0+tile+2)
    xw = x_ref[:, pl.ds(t0, tile + 4)]        # (C, tile+4)

    def conv3(src, w_ref, b_ref, width):
        # src has width+2 columns; output column i contracts src[:, i:i+3].
        acc = jnp.dot(w_ref[0], src[:, 0:width],
                      preferred_element_type=jnp.float32)
        acc = acc + jnp.dot(w_ref[1], src[:, 1:width + 1],
                            preferred_element_type=jnp.float32)
        acc = acc + jnp.dot(w_ref[2], src[:, 2:width + 2],
                            preferred_element_type=jnp.float32)
        return acc + b_ref[...]

    # Block1: SiLU -> conv3.  Zero padding is exact because the halo columns of
    # x are true zeros and silu(0) == 0.
    h = conv3(_silu(xw), w1_ref, b1_ref, tile + 2)          # (Cout, tile+2)

    # Re-impose true zero padding on h at the sequence boundaries for conv2
    # (select, not mask-multiply, so non-finite inputs cannot leak).
    t = t0 - 1 + jax.lax.broadcasted_iota(jnp.int32, (1, tile + 2), 1)
    h = jnp.where((t >= 0) & (t < lp_valid), h, 0.0)

    # Block2: SiLU -> conv3.
    out = conv3(_silu(h), w2_ref, b2_ref, tile)             # (Cout, tile)

    # Skip path: 1x1 conv on the raw (un-activated) input over this tile.
    out = out + jnp.dot(ws_ref[...], xw[:, 2:tile + 2],
                        preferred_element_type=jnp.float32) + bs_ref[...]
    o_ref[...] = out.astype(o_ref.dtype)


# -----------------------------------------------------------------------------
# Wrapper
# -----------------------------------------------------------------------------
def unpatcher_forward(x, params, patch_size, *, tile_cols=1024):
    """x: (B, C*p, L) float32 (NCL, as in PyTorch).  Returns (B, Cout, L*p)."""
    w1, b1, w2, b2, ws, bs = params
    B, CP, L = x.shape
    C = CP // patch_size
    Lp = L * patch_size
    Cout = w1.shape[2]

    # Lane tiling: output tile width is a multiple of 128 (lane-dense stores).
    assert tile_cols % 128 == 0
    tile = min(tile_cols, max(128, -(-Lp // 128) * 128))
    nt = -(-Lp // tile)                 # lane tiles per batch row
    w_out = nt * tile                   # padded output width (>= Lp, mult of 128)
    w_in = w_out + 4                    # +-2 halo for the two stacked k=3 convs

    # rearrange 'b (c p) l -> b c (l p)'.
    # TODO(synk): fuse this interleave into the kernel (polyphase taps or
    # strided stores) to remove the remaining wrapper-side HBM pass over x.
    x2 = (x.reshape(B, C, patch_size, L)
           .transpose(0, 1, 3, 2)
           .reshape(B, C, Lp))
    # Two explicit zero halo columns on the left + right pad to tiled width.
    x2 = jnp.pad(x2, ((0, 0), (0, 0), (2, w_in - 2 - Lp)))

    # Per-tap weights as (3, Cout, Cin); biases as (Cout, 1).  (One-time, tiny.)
    w1k = jnp.transpose(w1, (0, 2, 1))
    w2k = jnp.transpose(w2, (0, 2, 1))
    wsk = ws.T
    b1c = b1.reshape(Cout, 1)
    b2c = b2.reshape(Cout, 1)
    bsc = bs.reshape(Cout, 1)

    kernel = functools.partial(_unpatcher_kernel, tile=tile, lp_valid=Lp)
    cost = pl.CostEstimate(
        flops=2 * B * Lp * Cout * (3 * C + 3 * Cout + C),
        transcendentals=B * Lp * (C + Cout),
        bytes_accessed=4 * B * Lp * (C + Cout))

    out = pl.pallas_call(
        kernel,
        out_shape=jax.ShapeDtypeStruct((B, Cout, w_out), jnp.float32),
        grid=(B, nt),
        in_specs=[
            # Per-batch input row; block index changes only with b -> one DMA
            # per batch, stays resident across its lane tiles.
            pl.BlockSpec((None, C, w_in), lambda b, j: (b, 0, 0)),
            # Weights / biases: constant index_map -> DMA'd once, resident.
            pl.BlockSpec((3, Cout, C), lambda b, j: (0, 0, 0)),
            pl.BlockSpec((Cout, 1), lambda b, j: (0, 0)),
            pl.BlockSpec((3, Cout, Cout), lambda b, j: (0, 0, 0)),
            pl.BlockSpec((Cout, 1), lambda b, j: (0, 0)),
            pl.BlockSpec((Cout, C), lambda b, j: (0, 0)),
            pl.BlockSpec((Cout, 1), lambda b, j: (0, 0)),
        ],
        out_specs=pl.BlockSpec((None, Cout, tile), lambda b, j: (b, 0, j)),
        compiler_params=pltpu.CompilerParams(
            dimension_semantics=("parallel", "parallel"),
            vmem_limit_bytes=32 * 1024 * 1024),
        cost_estimate=cost,
    )(x2, w1k, b1c, w2k, b2c, wsk, bsc)

    return out[:, :, :Lp]


# -----------------------------------------------------------------------------
# Pure-JAX reference (for correctness check)
# -----------------------------------------------------------------------------
def unpatcher_reference(x, params, patch_size):
    w1, b1, w2, b2, ws, bs = params
    B, CP, L = x.shape
    C = CP // patch_size
    Lp = L * patch_size
    xr = x.reshape(B, C, patch_size, L).transpose(0, 1, 3, 2).reshape(B, C, Lp)

    def conv1d(a, w_kio, bias, pad):
        # a: (B, Cin, L); w_kio: (K, Cin, Cout) -> OIH = (Cout, Cin, K)
        w_oih = jnp.transpose(w_kio, (2, 1, 0))
        y = jax.lax.conv_general_dilated(
            a, w_oih, window_strides=(1,), padding=[(pad, pad)],
            dimension_numbers=("NCH", "OIH", "NCH"))
        return y + bias[None, :, None]

    h = conv1d(_silu(xr), w1, b1, pad=1)
    h = conv1d(_silu(h), w2, b2, pad=1)
    skip = conv1d(xr, ws[None], bs, pad=0)
    return h + skip


# -----------------------------------------------------------------------------
# Main
# -----------------------------------------------------------------------------
if __name__ == "__main__":
    # Module config: Unpatcher(in_channels=8, out_channels=8, patch_size=2)
    in_channels = 8
    out_channels = 8
    patch_size = 2
    C = in_channels // patch_size          # block input channels = 4
    Cout = out_channels                    # block output channels = 8

    B, L = 2, 16                           # input x: (B, in_channels, L)

    key = jax.random.PRNGKey(0)
    k_x, k_w1, k_b1, k_w2, k_b2, k_ws, k_bs = jax.random.split(key, 7)

    x = jax.random.normal(k_x, (B, in_channels, L), dtype=jnp.float32)

    # Deterministic parameter init (shapes follow nn.Conv1d in the module).
    # Conv weights stored as (K, Cin, Cout); skip as (Cin, Cout).
    scale = 0.1
    w1 = scale * jax.random.normal(k_w1, (3, C, Cout), dtype=jnp.float32)
    b1 = scale * jax.random.normal(k_b1, (Cout,), dtype=jnp.float32)
    w2 = scale * jax.random.normal(k_w2, (3, Cout, Cout), dtype=jnp.float32)
    b2 = scale * jax.random.normal(k_b2, (Cout,), dtype=jnp.float32)
    ws = scale * jax.random.normal(k_ws, (C, Cout), dtype=jnp.float32)
    bs = scale * jax.random.normal(k_bs, (Cout,), dtype=jnp.float32)

    params = (w1, b1, w2, b2, ws, bs)

    out = unpatcher_forward(x, params, patch_size)
    out = jax.block_until_ready(out)

    ref = unpatcher_reference(x, params, patch_size)
    assert out.shape == (B, out_channels, L * patch_size), out.shape
    assert jnp.allclose(out, ref, atol=2e-5, rtol=2e-5), (
        float(jnp.max(jnp.abs(out - ref))))

    print("KERNEL_OK")
</pallas_src>

<mosaic_0001>
module attributes {stable_mosaic.version = 11 : i64} {
  func.func @_unpatcher_kernel(%arg0: i32, %arg1: i32, %arg2: memref<1x4x132xf32, #tpu.memory_space<vmem>>, %arg3: memref<3x8x4xf32, #tpu.memory_space<vmem>>, %arg4: memref<8x1xf32, #tpu.memory_space<vmem>>, %arg5: memref<3x8x8xf32, #tpu.memory_space<vmem>>, %arg6: memref<8x1xf32, #tpu.memory_space<vmem>>, %arg7: memref<8x4xf32, #tpu.memory_space<vmem>>, %arg8: memref<8x1xf32, #tpu.memory_space<vmem>>, %arg9: memref<1x8x128xf32, #tpu.memory_space<vmem>>) attributes {dimension_semantics = [#tpu.dimension_semantics<parallel>, #tpu.dimension_semantics<parallel>], iteration_bounds = array<i64: 2, 1>, scalar_prefetch = 0 : i64, scratch_operands = 0 : i64, tpu.core_type = #tpu.core_type<tc>, window_params = [{transform_indices = @transform_0, window_bounds = array<i64: 1, 4, 132>}, {pipeline_mode = #tpu.pipeline_mode<synchronous>, transform_indices = @transform_1, window_bounds = array<i64: 3, 8, 4>}, {pipeline_mode = #tpu.pipeline_mode<synchronous>, transform_indices = @transform_2, window_bounds = array<i64: 8, 1>}, {pipeline_mode = #tpu.pipeline_mode<synchronous>, transform_indices = @transform_3, window_bounds = array<i64: 3, 8, 8>}, {pipeline_mode = #tpu.pipeline_mode<synchronous>, transform_indices = @transform_4, window_bounds = array<i64: 8, 1>}, {pipeline_mode = #tpu.pipeline_mode<synchronous>, transform_indices = @transform_5, window_bounds = array<i64: 8, 4>}, {pipeline_mode = #tpu.pipeline_mode<synchronous>, transform_indices = @transform_6, window_bounds = array<i64: 8, 1>}, {transform_indices = @transform_7, window_bounds = array<i64: 1, 8, 128>}]} {
    %c128_i32 = arith.constant 128 : i32
    %0 = arith.muli %arg1, %c128_i32 : i32
    %1 = tpu.assume_multiple %0, 128 : i32
    %c0 = arith.constant 0 : index
    %c0_0 = arith.constant 0 : index
    %2 = arith.index_cast %1 : i32 to index
    %3 = vector.load %arg2[%c0, %c0_0, %2] : memref<1x4x132xf32, #tpu.memory_space<vmem>>, vector<1x4x132xf32>
    %4 = vector.shape_cast %3 : vector<1x4x132xf32> to vector<4x132xf32>
    %5 = arith.negf %4 : vector<4x132xf32>
    %6 = math.exp %5 : vector<4x132xf32>
    %cst = arith.constant 1.000000e+00 : f32
    %7 = vector.broadcast %cst : f32 to vector<4x132xf32>
    %8 = arith.addf %7, %6 : vector<4x132xf32>
    %9 = arith.divf %7, %8 : vector<4x132xf32>
    %10 = arith.mulf %4, %9 : vector<4x132xf32>
    %c0_1 = arith.constant 0 : index
    %c0_2 = arith.constant 0 : index
    %c0_3 = arith.constant 0 : index
    %11 = vector.load %arg3[%c0_1, %c0_2, %c0_3] : memref<3x8x4xf32, #tpu.memory_space<vmem>>, vector<1x8x4xf32>
    %12 = vector.shape_cast %11 : vector<1x8x4xf32> to vector<8x4xf32>
    %13 = vector.extract_strided_slice %10 {offsets = [0, 0], sizes = [4, 130], strides = [1, 1]} : vector<4x132xf32> to vector<4x130xf32>
    %cst_4 = arith.constant dense<0.000000e+00> : vector<8x130xf32>
    %14 = tpu.matmul %12, %13, %cst_4 {dimension_numbers = #tpu.dot_dimension_numbers<[1], [0], [0], [1], [0, 0, 1, 1], [], []>} : vector<8x4xf32>, vector<4x130xf32>, vector<8x130xf32> -> vector<8x130xf32>
    %c1 = arith.constant 1 : index
    %c0_5 = arith.constant 0 : index
    %c0_6 = arith.constant 0 : index
    %15 = vector.load %arg3[%c1, %c0_5, %c0_6] : memref<3x8x4xf32, #tpu.memory_space<vmem>>, vector<1x8x4xf32>
    %16 = vector.shape_cast %15 : vector<1x8x4xf32> to vector<8x4xf32>
    %17 = vector.extract_strided_slice %10 {offsets = [0, 1], sizes = [4, 130], strides = [1, 1]} : vector<4x132xf32> to vector<4x130xf32>
    %cst_7 = arith.constant dense<0.000000e+00> : vector<8x130xf32>
    %18 = tpu.matmul %16, %17, %cst_7 {dimension_numbers = #tpu.dot_dimension_numbers<[1], [0], [0], [1], [0, 0, 1, 1], [], []>} : vector<8x4xf32>, vector<4x130xf32>, vector<8x130xf32> -> vector<8x130xf32>
    %19 = arith.addf %14, %18 : vector<8x130xf32>
    %c2 = arith.constant 2 : index
    %c0_8 = arith.constant 0 : index
    %c0_9 = arith.constant 0 : index
    %20 = vector.load %arg3[%c2, %c0_8, %c0_9] : memref<3x8x4xf32, #tpu.memory_space<vmem>>, vector<1x8x4xf32>
    %21 = vector.shape_cast %20 : vector<1x8x4xf32> to vector<8x4xf32>
    %22 = vector.extract_strided_slice %10 {offsets = [0, 2], sizes = [4, 130], strides = [1, 1]} : vector<4x132xf32> to vector<4x130xf32>
    %cst_10 = arith.constant dense<0.000000e+00> : vector<8x130xf32>
    %23 = tpu.matmul %21, %22, %cst_10 {dimension_numbers = #tpu.dot_dimension_numbers<[1], [0], [0], [1], [0, 0, 1, 1], [], []>} : vector<8x4xf32>, vector<4x130xf32>, vector<8x130xf32> -> vector<8x130xf32>
    %24 = arith.addf %19, %23 : vector<8x130xf32>
    %c0_11 = arith.constant 0 : index
    %c0_12 = arith.constant 0 : index
    %25 = vector.load %arg4[%c0_11, %c0_12] : memref<8x1xf32, #tpu.memory_space<vmem>>, vector<8x1xf32>
    %26 = vector.broadcast %25 : vector<8x1xf32> to vector<8x130xf32>
    %27 = arith.addf %24, %26 : vector<8x130xf32>
    %c1_i32 = arith.constant 1 : i32
    %28 = arith.subi %1, %c1_i32 : i32
    %29 = tpu.iota {dimensions = array<i32: 1>} : vector<1x130xi32>
    %30 = vector.broadcast %28 : i32 to vector<1x130xi32>
    %31 = arith.addi %30, %29 : vector<1x130xi32>
    %c0_i32 = arith.constant 0 : i32
    %32 = vector.broadcast %c0_i32 : i32 to vector<1x130xi32>
    %33 = arith.cmpi sge, %31, %32 : vector<1x130xi32>
    %c32_i32 = arith.constant 32 : i32
    %34 = vector.broadcast %c32_i32 : i32 to vector<1x130xi32>
    %35 = arith.cmpi slt, %31, %34 : vector<1x130xi32>
    %36 = arith.andi %33, %35 : vector<1x130xi1>
    %cst_13 = arith.constant 0.000000e+00 : f32
    %37 = vector.shape_cast %36 : vector<1x130xi1> to vector<1x130xi1>
    %38 = vector.broadcast %37 : vector<1x130xi1> to vector<8x130xi1>
    %39 = vector.broadcast %cst_13 : f32 to vector<8x130xf32>
    %40 = arith.select %38, %27, %39 : vector<8x130xi1>, vector<8x130xf32>
    %41 = arith.negf %40 : vector<8x130xf32>
    %42 = math.exp %41 : vector<8x130xf32>
    %cst_14 = arith.constant 1.000000e+00 : f32
    %43 = vector.broadcast %cst_14 : f32 to vector<8x130xf32>
    %44 = arith.addf %43, %42 : vector<8x130xf32>
    %45 = arith.divf %43, %44 : vector<8x130xf32>
    %46 = arith.mulf %40, %45 : vector<8x130xf32>
    %c0_15 = arith.constant 0 : index
    %c0_16 = arith.constant 0 : index
    %c0_17 = arith.constant 0 : index
    %47 = vector.load %arg5[%c0_15, %c0_16, %c0_17] : memref<3x8x8xf32, #tpu.memory_space<vmem>>, vector<1x8x8xf32>
    %48 = vector.shape_cast %47 : vector<1x8x8xf32> to vector<8x8xf32>
    %49 = vector.extract_strided_slice %46 {offsets = [0, 0], sizes = [8, 128], strides = [1, 1]} : vector<8x130xf32> to vector<8x128xf32>
    %cst_18 = arith.constant dense<0.000000e+00> : vector<8x128xf32>
    %50 = tpu.matmul %48, %49, %cst_18 {dimension_numbers = #tpu.dot_dimension_numbers<[1], [0], [0], [1], [0, 0, 1, 1], [], []>} : vector<8x8xf32>, vector<8x128xf32>, vector<8x128xf32> -> vector<8x128xf32>
    %c1_19 = arith.constant 1 : index
    %c0_20 = arith.constant 0 : index
    %c0_21 = arith.constant 0 : index
    %51 = vector.load %arg5[%c1_19, %c0_20, %c0_21] : memref<3x8x8xf32, #tpu.memory_space<vmem>>, vector<1x8x8xf32>
    %52 = vector.shape_cast %51 : vector<1x8x8xf32> to vector<8x8xf32>
    %53 = vector.extract_strided_slice %46 {offsets = [0, 1], sizes = [8, 128], strides = [1, 1]} : vector<8x130xf32> to vector<8x128xf32>
    %cst_22 = arith.constant dense<0.000000e+00> : vector<8x128xf32>
    %54 = tpu.matmul %52, %53, %cst_22 {dimension_numbers = #tpu.dot_dimension_numbers<[1], [0], [0], [1], [0, 0, 1, 1], [], []>} : vector<8x8xf32>, vector<8x128xf32>, vector<8x128xf32> -> vector<8x128xf32>
    %55 = arith.addf %50, %54 : vector<8x128xf32>
    %c2_23 = arith.constant 2 : index
    %c0_24 = arith.constant 0 : index
    %c0_25 = arith.constant 0 : index
    %56 = vector.load %arg5[%c2_23, %c0_24, %c0_25] : memref<3x8x8xf32, #tpu.memory_space<vmem>>, vector<1x8x8xf32>
    %57 = vector.shape_cast %56 : vector<1x8x8xf32> to vector<8x8xf32>
    %58 = vector.extract_strided_slice %46 {offsets = [0, 2], sizes = [8, 128], strides = [1, 1]} : vector<8x130xf32> to vector<8x128xf32>
    %cst_26 = arith.constant dense<0.000000e+00> : vector<8x128xf32>
    %59 = tpu.matmul %57, %58, %cst_26 {dimension_numbers = #tpu.dot_dimension_numbers<[1], [0], [0], [1], [0, 0, 1, 1], [], []>} : vector<8x8xf32>, vector<8x128xf32>, vector<8x128xf32> -> vector<8x128xf32>
    %60 = arith.addf %55, %59 : vector<8x128xf32>
    %c0_27 = arith.constant 0 : index
    %c0_28 = arith.constant 0 : index
    %61 = vector.load %arg6[%c0_27, %c0_28] : memref<8x1xf32, #tpu.memory_space<vmem>>, vector<8x1xf32>
    %62 = vector.broadcast %61 : vector<8x1xf32> to vector<8x128xf32>
    %63 = arith.addf %60, %62 : vector<8x128xf32>
    %c0_29 = arith.constant 0 : index
    %c0_30 = arith.constant 0 : index
    %64 = vector.load %arg7[%c0_29, %c0_30] : memref<8x4xf32, #tpu.memory_space<vmem>>, vector<8x4xf32>
    %65 = vector.extract_strided_slice %4 {offsets = [0, 2], sizes = [4, 128], strides = [1, 1]} : vector<4x132xf32> to vector<4x128xf32>
    %cst_31 = arith.constant dense<0.000000e+00> : vector<8x128xf32>
    %66 = tpu.matmul %64, %65, %cst_31 {dimension_numbers = #tpu.dot_dimension_numbers<[1], [0], [0], [1], [0, 0, 1, 1], [], []>} : vector<8x4xf32>, vector<4x128xf32>, vector<8x128xf32> -> vector<8x128xf32>
    %67 = arith.addf %63, %66 : vector<8x128xf32>
    %c0_32 = arith.constant 0 : index
    %c0_33 = arith.constant 0 : index
    %68 = vector.load %arg8[%c0_32, %c0_33] : memref<8x1xf32, #tpu.memory_space<vmem>>, vector<8x1xf32>
    %69 = vector.broadcast %68 : vector<8x1xf32> to vector<8x128xf32>
    %70 = arith.addf %67, %69 : vector<8x128xf32>
    %c0_34 = arith.constant 0 : index
    %c0_35 = arith.constant 0 : index
    %c0_36 = arith.constant 0 : index
    %71 = vector.load %arg9[%c0_34, %c0_35, %c0_36] : memref<1x8x128xf32, #tpu.memory_space<vmem>>, vector<1x8x128xf32>
    %72 = vector.shape_cast %71 : vector<1x8x128xf32> to vector<8x128xf32>
    %73 = vector.shape_cast %70 : vector<8x128xf32> to vector<1x8x128xf32>
    tpu.vector_store %arg9[%c0_34, %c0_35, %c0_36], %73 {strides = array<i32>} : memref<1x8x128xf32, #tpu.memory_space<vmem>>, vector<1x8x128xf32>,
    return
  }
  func.func @transform_0(%arg0: i32, %arg1: i32) -> (i32, i32, i32) {
    %c0_i32 = arith.constant 0 : i32
    %c0_i32_0 = arith.constant 0 : i32
    %c0_i32_1 = arith.constant 0 : i32
    return %arg0, %c0_i32, %c0_i32_0 : i32, i32, i32
  }
  func.func @transform_1(%arg0: i32, %arg1: i32) -> (i32, i32, i32) {
    %c0_i32 = arith.constant 0 : i32
    %c0_i32_0 = arith.constant 0 : i32
    %c0_i32_1 = arith.constant 0 : i32
    %c0_i32_2 = arith.constant 0 : i32
    return %c0_i32, %c0_i32_0, %c0_i32_1 : i32, i32, i32
  }
  func.func @transform_2(%arg0: i32, %arg1: i32) -> (i32, i32) {
    %c0_i32 = arith.constant 0 : i32
    %c0_i32_0 = arith.constant 0 : i32
    %c0_i32_1 = arith.constant 0 : i32
    return %c0_i32, %c0_i32_0 : i32, i32
  }
  func.func @transform_3(%arg0: i32, %arg1: i32) -> (i32, i32, i32) {
    %c0_i32 = arith.constant 0 : i32
    %c0_i32_0 = arith.constant 0 : i32
    %c0_i32_1 = arith.constant 0 : i32
    %c0_i32_2 = arith.constant 0 : i32
    return %c0_i32, %c0_i32_0, %c0_i32_1 : i32, i32, i32
  }
  func.func @transform_4(%arg0: i32, %arg1: i32) -> (i32, i32) {
    %c0_i32 = arith.constant 0 : i32
    %c0_i32_0 = arith.constant 0 : i32
    %c0_i32_1 = arith.constant 0 : i32
    return %c0_i32, %c0_i32_0 : i32, i32
  }
  func.func @transform_5(%arg0: i32, %arg1: i32) -> (i32, i32) {
    %c0_i32 = arith.constant 0 : i32
    %c0_i32_0 = arith.constant 0 : i32
    %c0_i32_1 = arith.constant 0 : i32
    return %c0_i32, %c0_i32_0 : i32, i32
  }
  func.func @transform_6(%arg0: i32, %arg1: i32) -> (i32, i32) {
    %c0_i32 = arith.constant 0 : i32
    %c0_i32_0 = arith.constant 0 : i32
    %c0_i32_1 = arith.constant 0 : i32
    return %c0_i32, %c0_i32_0 : i32, i32
  }
  func.func @transform_7(%arg0: i32, %arg1: i32) -> (i32, i32, i32) {
    %c0_i32 = arith.constant 0 : i32
    %c0_i32_0 = arith.constant 0 : i32
    return %arg0, %c0_i32, %arg1 : i32, i32, i32
  }
}

</mosaic_0001>

<bundles_post_ra>
// kernel: tpu_custom_call.1
= control target key start
LH: loop header
LB: loop body
LE: loop exit
PB: predicated region body
PF: predicated region fallthrough
CT: control target
= control target key end

     0   :  { %12 = vsyncpa [#allocation3], 0  ;;  %s1479_s0 = inlined_call_operand.vmem [shape: f32[2,4,132], index: 0, kind: input, shape index: {}]   ;;  %s1480_s1 = inlined_call_operand.vmem [shape: f32[3,8,4], index: 1, kind: input, shape index: {}]   ;;  %s1481_s2 = inlined_call_operand.vmem [shape: f32[8,1], index: 2, kind: input, shape index: {}]   ;;  %s1482_s3 = inlined_call_operand.vmem [shape: f32[3,8,8], index: 3, kind: input, shape index: {}]   ;;  %s1483_s4 = inlined_call_operand.vmem [shape: f32[8,1], index: 4, kind: input, shape index: {}]   ;;  %s1484_s5 = inlined_call_operand.vmem [shape: f32[8,4], index: 5, kind: input, shape index: {}]   ;;  %s1485_s6 = inlined_call_operand.vmem [shape: f32[8,1], index: 6, kind: input, shape index: {}]   ;;  %s1486_s7 = inlined_call_operand.hbm [shape: f32[2,8,128], index: 7, kind: output, shape index: {}]  }
   0x1   :  { %14 = vsyncpa [#allocation3 + $0x1], 0  ;;  %s1284_s24 = smov 0   ;;  %s1286_s25 = smov 0  }
   0x2   :  { %s1288_s26 = smov 0   ;;  %s1290_s27 = smov 0  }
   0x3   :  { %s1292_s28 = smov 0   ;;  %s1294_s29 = smov 0  }
   0x4 LB: > { %s1026_s30 = sadd.s32 4294967295, %s1236_s29   ;;  %s1027_s8 = sadd.s32 4294967294, %s1236_s29   ;;  %s1236_s29 = sphi %s1294_s29, %s20_s29   ;;  %s1232_s28 = sphi %s1292_s28, %s1493_s28   ;;  %s1228_s27 = sphi %s1290_s27, %s1492_s27   ;;  %s1224_s26 = sphi %s1288_s26, %s1491_s26   ;;  %s1220_s25 = sphi %s1286_s25, %s1490_s25   ;;  %s1216_s24 = sphi %s1284_s24, %s1489_s24  }
   0x5   : > { %s32_s9 = sadd.s32 1, %s1232_s28  ;;  %s193_s10 = sadd.s32 1, %s1224_s26 }
   0x6   : > { %p34_p0 = scmp.ge.s32.totalorder %s32_s9, 2  ;;  %p203_p1 = scmp.ne.s32.totalorder %s1224_s26, %s1220_s25 }
   0x7   : > { %p204_p2 = scmp.eq.s32.totalorder %s1026_s30, 1  ;;  %p209_p3 = scmp.ne.s32.totalorder %s1220_s25, %s1216_s24 }
   0x8   : > { %s1495_s9 = smov (%p34_p0, %s32_s9), 0  ;;  %p210_p5 = scmp.eq.s32.totalorder %s1027_s8, 1 }
   0x9   : > { %p1324_p4 = por %p204_p2, %p203_p1  ;;  %s188_s12 = ssub.s32 %s1232_s28, %s1495_s9 }
   0xa   : > { %p1030_p6 = scmp.ge.s32.totalorder %s1236_s29, 1  ;;  %p191_p7 = scmp.eq.s32.totalorder %s188_s12, 0 }
   0xb   : > { %p1331_p8 = por %p210_p5, %p209_p3  ;;  %p254_p9 = scmp.lt.s32.totalorder %s1236_s29, 3 }
   0xc   : > { %s1337_s14 = scalar_select %p191_p7, %s1224_s26, %s193_s10  }
   0xd   : > { %p255_p10 = pnand %p1030_p6, %p254_p9 }
   0xe   : > { %p286_p11 = scmp.lt.s32.totalorder (!%p255_p10), %s1228_s27, 1  ;;  %v1238_v4 = vmov (!%p255_p10), 0.0   ;;  %v1239_v7 = vmov (!%p255_p10), 0   ;;  %vm319_vm0 = vcmask (!%p255_p10), 1043456   ;;  %s1240_s20 = smov (!%p255_p10), 126   ;;  %vm315_vm1 = vcmask (!%p255_p10), 31744  }
   0xf   : > { %258 = sbr.rel (%p255_p10) target bundleno = 780 (0x30c), region = 48  ;;  %388 = vmatprep.mubr.f32.mxu0 (!%p255_p10), %v1238_v4  ;;  %466 = vmatprep.mubr.f32.mxu1 (!%p255_p10), %v1238_v4  ;;  %s1241_s21 = smov (!%p255_p10), 127   ;;  %v304_v9 = vld [vmem:[%s1480_s1] sm:$0xff] (!%p255_p10)  ;;  %vm313_vm2 = vcmask (!%p255_p10), 1039360   ;;  %vm479_vm3 = vcmask (!%p255_p10), 1031168   ;;  %v1035_v15 = vld [vmem:[%s1480_s1 + $0x8] sm:$0xff] (!%p255_p10)  ;;  %v570_v21 = vlaneseq (!%p255_p10) }
  0x10   : > { %1147 = vset.pattern.permute.xlu0 (!%p255_p10), %v1239_v7  ;;  %1148 = vset.pattern.permute.xlu1 (!%p255_p10), %v1239_v7  ;;  %v561_v10 = vld [vmem:[%s1481_s2] sm:$0xff] (!%p255_p10)  ;;  %v1042_v18 = vld [vmem:[%s1480_s1 + $0x10] sm:$0xff] (!%p255_p10)  ;;  %vm1242_vm7 = vmmov (!%p255_p10), 0   ;;  %vm613_vm8 = vcmask (!%p255_p10), 64512   ;;  %v1047_v44 = vld [vmem:[%s1482_s3 + $0x8] sm:$0xff] (!%p255_p10)  ;;  %s1055_s18 = sshll.u32 (!%p255_p10), %s1228_s27, 7 }
  0x11   : > { %v571_v22 = vand.u32 (!%p255_p10), 127, %v570_v21  ;;  %v602_v38 = vld [vmem:[%s1482_s3] sm:$0xff] (!%p255_p10)  ;;  %v1050_v48 = vld [vmem:[%s1482_s3 + $0x10] sm:$0xff] (!%p255_p10)  ;;  %s1432_s30 = scalar_lea.hbm (!%p255_p10), %s1486_s7, %s1055_s18 }
  0x12   : > { %v842_v40 = vld [vmem:[%s1483_s4] sm:$0xff] (!%p255_p10) }
  0x13   : > { %v574_v23 = vadd.s32 (!%p255_p10), 4294967295, %v571_v22  ;;  %v933_v41 = vld [vmem:[%s1485_s6] sm:$0xff] (!%p255_p10) }
  0x14   : > { %v849_v52 = vld [vmem:[%s1484_s5] sm:$0xff] (!%p255_p10) }
  0x15   : > { %vm576_vm4 = vcmp.ge.s32.totalorder (!%p255_p10), %v574_v23, 0  ;;  %vm578_vm5 = vcmp.lt.s32.totalorder (!%p255_p10), %v574_v23, 32 }
  0x16   : > { %s287_s15 = scalar_select %p286_p11, %s1228_s27, 1  ;;  %vm580_vm6 = vmand %vm576_vm4, %vm578_vm5 }
  0x17   : > { %s1243_s27 = smov [#allocation2]  }
  0x18   : > { %s1058_s16 = sshll.u32 %s287_s15, 3  ;;  %s1162_s10 = sshll.u32 %s1243_s27, 4  ;;  %s1163_s10 = int_to_ptr.vmem [resolvable:$false] %s1162_s10 }
  0x19   : > { %s290_s19 = scalar_lea.vmem %s1479_s0, %s1058_s16  ;;  %s283_s16 = sand.u32 1, %s1220_s25  }
  0x1a   : > { %v1344_v0 = vld [vmem:[%s290_s19] sm:$0xff]  ;;  %s1031_s17 = sshll.u32 %s283_s16, 3  ;;  %s942_s8 = scalar_lea.sflag [#allocation3], %s283_s16 }
  0x1b   : > { %v1034_v1 = vmul.f32 -1.442695, %v1344_v0  ;;  %v851_v39 = vcombine.high %v1344_v0, %v1344_v0  ;;  %s285_s19 = scalar_lea.vmem [#allocation2], %s1031_s17  ;;  %s1164_s12 = scalar_lea.vmem %s1163_s10, 256 }
  0x1c   : > { %s956_s22 = sshll.u32 %s285_s19, 4  ;;  %s1434_s22 = int_to_ptr.vmem [resolvable:$true] %s956_s22 }
  0x1d   : > { %1150 = vpow2.f32 %v1034_v1  ;;  %p1165_p1 = scmp.lt.s32.totalorder %s1434_s22, %s1163_s10 }
  0x27   : > { %v1151_v2 = vpop.eup %1150 }
  0x28   : > { %v300_v3 = vadd.f32 1.0, %v1151_v2 }
  0x2a   : > { %1152 = vrcp.f32 %v300_v3 }
  0x34   : > { %v1153_v5 = vpop.eup %1152 }
  0x35   : > { %v303_v6 = vmul.f32 %v1153_v5, %v1344_v0 }
  0x37   : > { %475 = vrot.lane.b32.xlu1 %v303_v6, %s1240_s20  ;;  %309 = vrot.lane.b32.xlu0 %v303_v6, %s1241_s21  ;;  %v308_v8 = vcombine.high %v303_v6, %v303_v6 }
  0x39   : > { %1039 = vmatprep.subr.msk.mxu1 %vm319_vm0, %v308_v8 }
  0x3a   : > { %1040 = vmatpush1.msk.msra.mxu1 %vm319_vm0, %v303_v6 }
  0x3b   : > { %477 = vrot.lane.b32.xlu1 %v308_v8, %s1240_s20  ;;  %311 = vrot.lane.b32.xlu0 %v308_v8, %s1241_s21 }
  0x3c   : > { %1041 = vmatmul.mubr.msk.f32.vlgmr.msra.gmra.mrb[0].mxu1 %vm315_vm1, %v304_v9  ;;  %1067 = vmatprep.subr.mxu1 %v1238_v4 }
  0x3d   : > { %1069 = vmatprep.mubr.msk.f32.mxu1 %vm1242_vm7, %v1238_v4 }
  0x3f   : > { %564 = vperm.xlu0 %1147, %v561_v10   ;;  %609 = vrot.lane.b32.xlu1 %v1238_v4, %s1241_s21 }
  0xa9   : > { %v476_v11 = vpop.permute.xlu1 %475  ;;  %v310_v12 = vpop.permute.xlu0 %309 }
  0xad   : > { %v478_v13 = vpop.permute.xlu1 %477  ;;  %v312_v14 = vpop.permute.xlu0 %311 }
  0xae   : > { %1036 = vmatprep.subr.msk.mxu0 %vm319_vm0, %v312_v14  ;;  %v314_v16 = vsel %vm313_vm2, %v310_v12, %v312_v14  ;;  %v480_v17 = vsel %vm479_vm3, %v476_v11, %v478_v13 }
  0xaf   : > { %1037 = vmatpush1.msk.msra.mxu0 %vm319_vm0, %v314_v16 }
  0xb0   : > { %1038 = vmatmul.mubr.msk.f32.vlgmr.msra.gmra.mrb[0].mxu0 %vm315_vm1, %v1035_v15  ;;  %1043 = vmatprep.subr.msk.mxu0 %vm319_vm0, %v478_v13 }
  0xb1   : > { %1044 = vmatpush1.msk.msra.mxu0 %vm319_vm0, %v480_v17  ;;  %552 = vmatprep.mubr.f32.mxu0 %v1238_v4  ;;  %v610_v42 = vpop.permute.xlu1 %609 }
  0xb2   : > { %1072 = vmatprep.subr.mxu0 %v1238_v4 }
  0xb4   : > { %1045 = vmatmul.mubr.msk.f32.vlgmr.msra.gmra.mrb[2].mxu0 %vm315_vm1, %v1042_v18 }
  0xb5   : > { %1074 = vmatprep.mubr.msk.f32.mxu0 %vm1242_vm7, %v1238_v4 }
  0xbe   : > { %v565_v28 = vpop.permute.xlu0 %564 }
 0x10f   : > { %v468_v19 = vpop.f32.mrb[0].mxu1 }
 0x110   : > { %v470_v20 = vpop.f32.mrb[1].mxu1 }
 0x183   : > { %v390_v24 = vpop.f32.mrb[0].mxu0 }
 0x184   : > { %v469_v25 = vadd.f32 %v468_v19, %v390_v24  ;;  %v392_v26 = vpop.f32.mrb[1].mxu0 }
 0x187   : > { %v554_v27 = vpop.f32.mrb[2].mxu0 }
 0x188   : > { %v559_v29 = vadd.f32 %v554_v27, %v469_v25  ;;  %v556_v30 = vpop.f32.mrb[3].mxu0 }
 0x18a   : > { %v567_v31 = vadd.f32 %v565_v28, %v559_v29 }
 0x18c   : > { %v586_v32 = vsel %vm580_vm6, %v567_v31, 0.0 }
 0x18d   : > { %v1046_v33 = vmul.f32 -1.442695, %v586_v32 }
 0x18f   : > { %1154 = vpow2.f32 %v1046_v33 }
 0x199   : > { %v1155_v34 = vpop.eup %1154 }
 0x19a   : > { %v594_v35 = vadd.f32 1.0, %v1155_v34 }
 0x19c   : > { %1156 = vrcp.f32 %v594_v35 }
 0x1a6   : > { %v1157_v36 = vpop.eup %1156 }
 0x1a7   : > { %v600_v37 = vmul.f32 %v1157_v36, %v586_v32 }
 0x1a9   : > { %762 = vrot.lane.b32.xlu0 %v600_v37, %s1240_s20  ;;  %607 = vrot.lane.b32.xlu1 %v600_v37, %s1241_s21 }
 0x1aa   : > { %1073 = vmatpush3.msra.mxu0 %v600_v37 }
 0x1ab   : > { %1075 = vmatmul.mubr.msk.f32.vlgmr.msra.gmra.mrb[4].mxu0 %vm613_vm8, %v602_v38  ;;  %1082 = vmatprep.subr.mxu0 %v1238_v4 }
 0x1ac   : > { %1084 = vmatprep.mubr.msk.f32.mxu0 %vm1242_vm7, %v1238_v4 }
 0x1ad   : > { %852 = vrot.lane.b32.xlu0 %v1344_v0, %s1240_s20  ;;  %764 = vrot.lane.b32.xlu1 %v1238_v4, %s1240_s20 }
 0x1b1   : > { %845 = vperm.xlu0 %1147, %v842_v40   ;;  %854 = vrot.lane.b32.xlu1 %v851_v39, %s1240_s20  ;;  %s1158_s20 = scalar_lea.vmem %s1434_s22, 128 }
 0x1b2   : > { %p1159_p12 = scmp.ne.s32.totalorder %s1434_s22, %s1158_s20  ;;  %p1166_p2 = scmp.lt.s32.totalorder %s1164_s12, %s1158_s20 }
 0x1b4   : > { %p1160_p13 = pnand %p1159_p12, %p1324_p4  ;;  %p1167_p3 = por %p1166_p2, %p1165_p1 }
 0x1b5   : > { %936 = vperm.xlu1 %1148, %v933_v41  }
 0x1b6   : > { %p1161_p0 = pneg %p1160_p13 }
 0x1b8   : > { %p1168_p5 = pnand %p1167_p3, %p1161_p0 }
 0x21b   : > { %v608_v43 = vpop.permute.xlu1 %607  ;;  %v763_v46 = vpop.permute.xlu0 %762 }
 0x21c   : > { %v611_v45 = vsel %vm313_vm2, %v608_v43, %v610_v42 }
 0x21d   : > { %1068 = vmatpush3.msra.mxu1 %v611_v45 }
 0x21e   : > { %1070 = vmatmul.mubr.msk.f32.vlgmr.msra.gmra.mrb[2].mxu1 %vm613_vm8, %v1047_v44  ;;  %1077 = vmatprep.subr.mxu1 %v1238_v4 }
 0x21f   : > { %v765_v47 = vpop.permute.xlu1 %764  ;;  %1079 = vmatprep.mubr.msk.f32.mxu1 %vm1242_vm7, %v1238_v4  ;;  %v853_v50 = vpop.permute.xlu0 %852 }
 0x220   : > { %v766_v49 = vsel %vm479_vm3, %v763_v46, %v765_v47 }
 0x221   : > { %1078 = vmatpush3.msra.mxu1 %v766_v49 }
 0x222   : > { %1080 = vmatmul.mubr.msk.f32.vlgmr.msra.gmra.mrb[4].mxu1 %vm613_vm8, %v1050_v48 }
 0x223   : > { %v855_v51 = vpop.permute.xlu1 %854 }
 0x224   : > { %v856_v53 = vsel %vm479_vm3, %v853_v50, %v855_v51 }
 0x225   : > { %1083 = vmatpush3.msk.msra.mxu0 %vm319_vm0, %v856_v53 }
 0x226   : > { %1085 = vmatmul.mubr.msk.f32.vlgmr.msra.gmra.mrb[6].mxu0 %vm315_vm1, %v849_v52 }
 0x230   : > { %v846_v62 = vpop.permute.xlu0 %845 }
 0x234   : > { %v937_v1 = vpop.permute.xlu1 %936 }
 0x27e   : > { %v756_v54 = vpop.f32.mrb[4].mxu0 }
 0x27f   : > { %v1076_v55 = vpop.f32.mrb[5].mxu0 }
 0x2f1   : > { %v683_v56 = vpop.f32.mrb[2].mxu1 }
 0x2f2   : > { %v757_v57 = vadd.f32 %v756_v54, %v683_v56  ;;  %v1071_v58 = vpop.f32.mrb[3].mxu1 }
 0x2f5   : > { %v837_v59 = vpop.f32.mrb[4].mxu1 }
 0x2f6   : > { %v841_v60 = vadd.f32 %v837_v59, %v757_v57  ;;  %v1081_v61 = vpop.f32.mrb[5].mxu1 }
 0x2f8   : > { %v848_v63 = vadd.f32 %v846_v62, %v841_v60 }
 0x2f9   : > { %v928_v0 = vpop.f32.mrb[6].mxu0 }
 0x2fa   : > { %v932_v2 = vadd.f32 %v928_v0, %v848_v63  ;;  %v1086_v3 = vpop.f32.mrb[7].mxu0 }
 0x2fc   : > { %v939_v4 = vadd.f32 %v937_v1, %v932_v2 }
 0x2fe   : > { %940 = vst [vmem:[%s285_s19] sm:$0xff] %v939_v4 }
 0x2ff   : > { %1171 = shalt.err (!%p1168_p5)
}
 0x300   : > { %s1172_s15 = scalar_lea.hbm %s1432_s30, 128  ;;  %s1176_s18 = scalar_lea.hbm %s1486_s7, 256 }
 0x301   : > { %p1173_p6 = scmp.ne.s32.totalorder %s1432_s30, %s1172_s15  ;;  %p1177_p10 = scmp.lt.u32.totalorder %s1432_s30, %s1486_s7 }
 0x302   : > { %p1178_p11 = scmp.lt.u32.totalorder %s1176_s18, %s1172_s15  ;;  %p1180_p13 = scmp.lt.u32.totalorder %s1172_s15, %s1432_s30 }
 0x303   : > { %p1174_p7 = pnand %p1173_p6, %p1324_p4 }
 0x304   : > { %p1179_p12 = por %p1178_p11, %p1177_p10 }
 0x305   : > { %p1175_p9 = pneg %p1174_p7 }
 0x306   : > { %p1181_p0 = por %p1180_p13, %p1179_p12 }
 0x308   : > { %p1182_p1 = pnand %p1181_p0, %p1175_p9 }
 0x30a   : > { %1185 = shalt.err (!%p1182_p1)
}
 0x30b   : > { %1087 = dma.vmem_to_hbm [thread:$0]  (%p1324_p4), %s1434_s22, 128, %s1432_s30, %s942_s8  }
 0x30c PF: > { %p1093_p2 = scmp.ge.s32.totalorder %s1236_s29, 2  ;;  %s968_s23 = sand.u32 1, %s1216_s24  }
 0x30d   : > { %s969_s20 = scalar_lea.sflag [#allocation3], %s968_s23 }
 0x30e   : > { %p1090_p3 = pnand %p1093_p2, %p1331_p8 }
 0x310   : > { %1211 = dma.done.wait (!%p1090_p3), %s969_s20, 128  }
 0x311   : > { %1213 = vsyncadd (!%p1090_p3), %s969_s20, 4294967168  ;;  %s20_s29 = sadd.s32 1, %s1236_s29   ;;  %s1489_s24 = smov %s1220_s25 }
 0x312   : > { %p17_p5 = scmp.ge.s32.totalorder %s20_s29, 4   ;;  %s1490_s25 = smov %s1224_s26 }
 0x313   : > { %s1491_s26 = smov %s1337_s14  ;;  %s1492_s27 = smov %s1232_s28 }
 0x314   : > { %s1493_s28 = smov %s1495_s9  ;;  %19 = sbr.rel (!%p17_p5) target bundleno = 4 (0x4), region = 88 }
 0x31b   :  { %974 = vsyncpa [#allocation3], 1 }
 0x31c   :  { %976 = vsyncpa [#allocation3 + $0x1], 1 }

</bundles_post_ra>
